<compile_context>
chip_gen: v7x
topology: tpu7x:2x2x1
jax: 0.10.0
libtpu: 0.0.40
codegen_flags: <defaults>
</compile_context>

<pallas_src>
import functools

import jax
import jax.numpy as jnp
from jax.experimental import pallas as pl
from jax.experimental.pallas import tpu as pltpu


def _round_up(a: int, b: int) -> int:
    return (a + b - 1) // b * b


def _head_kernel(x_ref, w1_ref, w2_ref, w3_ref, o_ref):
    # x_ref:  (tm, H)          activations, compute dtype (bf16 by default)
    # w1_ref: (H, H)           PyTorch layout [out, in]
    # w2_ref: (H, H)           PyTorch layout [out, in]
    # w3_ref: (Lp, H)          PyTorch layout [out, in], rows zero-padded to Lp
    # o_ref:  (tm, Lp)
    cdt = x_ref.dtype
    # Contract x's last dim against the weights' last (in_features) dim so the
    # weights never need a host/XLA-side transpose.
    dn = (((1,), (1,)), ((), ()))
    h1 = jax.lax.dot_general(x_ref[...], w1_ref[...], dn,
                             preferred_element_type=jnp.float32)
    h2 = jax.lax.dot_general(h1.astype(cdt), w2_ref[...], dn,
                             preferred_element_type=jnp.float32)
    h3 = jax.lax.dot_general(h2.astype(cdt), w3_ref[...], dn,
                             preferred_element_type=jnp.float32)
    o_ref[...] = h3.astype(o_ref.dtype)


@functools.partial(jax.jit, static_argnames=("compute_dtype",))
def classification_head(x, w1, w2, w3, *, compute_dtype=jnp.bfloat16):
    """x: [..., H]; w1, w2: [H, H]; w3: [L, H] (PyTorch [out, in] layout)."""
    orig_shape = x.shape
    hidden = orig_shape[-1]
    num_labels = w3.shape[0]
    out_dtype = x.dtype

    x2d = x.reshape(-1, hidden)
    m = x2d.shape[0]

    # --- Tiling -------------------------------------------------------------
    # MXU-friendly row tile (multiple of 256 on v6e/v7x); for small problems
    # fall back to the whole (sublane-aligned) extent.
    tm = 256 if m >= 256 else _round_up(m, 8)
    m_pad = _round_up(m, tm)
    # Lane-dense output: pad the tiny label dim up to a full 128-lane vreg.
    l_pad = _round_up(max(num_labels, 128), 128)

    # --- Boundary casts / padding (cheap glue; constant-folds for weights
    # that are jit constants) --------------------------------------------------
    if m_pad != m:
        x2d = jnp.pad(x2d, ((0, m_pad - m), (0, 0)))
    w3p = jnp.pad(w3, ((0, l_pad - num_labels), (0, 0)))

    xc = x2d.astype(compute_dtype)
    w1c = w1.astype(compute_dtype)
    w2c = w2.astype(compute_dtype)
    w3c = w3p.astype(compute_dtype)

    cb = jnp.dtype(compute_dtype).itemsize
    ob = jnp.dtype(out_dtype).itemsize

    # --- VMEM budget (weights resident + double-buffered x/out tiles +
    # f32 intermediates) -------------------------------------------------------
    # TODO(synk): for very large hidden sizes (f32/bf16 weights > ~half of v7x's
    # 64 MiB VMEM) add a K-reduction grid axis with an f32 accumulator scratch.
    vmem_bytes = (
        2 * (2 * hidden * hidden + l_pad * hidden) * cb   # resident weights
        + 2 * tm * hidden * cb                            # double-buffered x
        + 2 * tm * l_pad * ob                             # double-buffered out
        + 2 * tm * hidden * 4                             # f32 h1/h2 temps
    )
    vmem_limit = int(vmem_bytes) + (4 << 20)

    grid = (m_pad // tm,)

    cost = pl.CostEstimate(
        flops=2 * m_pad * (2 * hidden * hidden + hidden * l_pad),
        transcendentals=0,
        bytes_accessed=(m_pad * hidden * cb
                        + (2 * hidden * hidden + l_pad * hidden) * cb
                        + m_pad * l_pad * ob),
    )

    out2d = pl.pallas_call(
        _head_kernel,
        out_shape=jax.ShapeDtypeStruct((m_pad, l_pad), out_dtype),
        grid=grid,
        in_specs=[
            pl.BlockSpec((tm, hidden), lambda i: (i, 0)),       # x tile (pipelined)
            pl.BlockSpec((hidden, hidden), lambda i: (0, 0)),   # w1 (resident)
            pl.BlockSpec((hidden, hidden), lambda i: (0, 0)),   # w2 (resident)
            pl.BlockSpec((l_pad, hidden), lambda i: (0, 0)),    # w3 (resident)
        ],
        out_specs=pl.BlockSpec((tm, l_pad), lambda i: (i, 0)),
        compiler_params=pltpu.CompilerParams(
            dimension_semantics=("parallel",),   # v7x: shard M across 2 TCs
            vmem_limit_bytes=vmem_limit,
        ),
        cost_estimate=cost,
    )(xc, w1c, w2c, w3c)

    out2d = out2d[:m, :num_labels]
    return out2d.reshape(*orig_shape[:-1], num_labels)


if __name__ == "__main__":
    # config: hidden_size=32, num_labels=8; input x: [batch=2, seq=8, hidden=32]
    batch, seq, hidden, num_labels = 2, 8, 32, 8

    key = jax.random.PRNGKey(0)
    kx, k1, k2, k3 = jax.random.split(key, 4)

    x = jax.random.normal(kx, (batch, seq, hidden), dtype=jnp.float32)

    # Deterministic init mimicking nn.Linear default U(-1/sqrt(in), 1/sqrt(in)),
    # weights stored PyTorch-style as [out_features, in_features].
    bound = 1.0 / (hidden ** 0.5)
    w1 = jax.random.uniform(k1, (hidden, hidden), jnp.float32, -bound, bound)
    w2 = jax.random.uniform(k2, (hidden, hidden), jnp.float32, -bound, bound)
    w3 = jax.random.uniform(k3, (num_labels, hidden), jnp.float32, -bound, bound)

    # Reference (same semantics as the PyTorch forward).
    ref = x @ w1.T @ w2.T @ w3.T

    # Default path: bf16 MXU compute with f32 accumulation.
    out_bf16 = jax.block_until_ready(classification_head(x, w1, w2, w3))
    assert out_bf16.shape == (batch, seq, num_labels)
    assert jnp.allclose(out_bf16, ref, atol=5e-2, rtol=5e-2)

    # Full-precision path: exact match to the f32 reference.
    out_f32 = jax.block_until_ready(
        classification_head(x, w1, w2, w3, compute_dtype=jnp.float32))
    assert out_f32.shape == (batch, seq, num_labels)
    assert jnp.allclose(out_f32, ref, atol=1e-4, rtol=1e-4)

    print("KERNEL_OK")
</pallas_src>

<mosaic_0001>
module attributes {stable_mosaic.version = 11 : i64} {
  func.func @_head_kernel(%arg0: i32, %arg1: memref<16x32xbf16, #tpu.memory_space<vmem>>, %arg2: memref<32x32xbf16, #tpu.memory_space<vmem>>, %arg3: memref<32x32xbf16, #tpu.memory_space<vmem>>, %arg4: memref<128x32xbf16, #tpu.memory_space<vmem>>, %arg5: memref<16x128xf32, #tpu.memory_space<vmem>>) attributes {dimension_semantics = [#tpu.dimension_semantics<parallel>], iteration_bounds = array<i64: 1>, scalar_prefetch = 0 : i64, scratch_operands = 0 : i64, tpu.core_type = #tpu.core_type<tc>, window_params = [{transform_indices = @transform_0, window_bounds = array<i64: 16, 32>}, {pipeline_mode = #tpu.pipeline_mode<synchronous>, transform_indices = @transform_1, window_bounds = array<i64: 32, 32>}, {pipeline_mode = #tpu.pipeline_mode<synchronous>, transform_indices = @transform_2, window_bounds = array<i64: 32, 32>}, {pipeline_mode = #tpu.pipeline_mode<synchronous>, transform_indices = @transform_3, window_bounds = array<i64: 128, 32>}, {transform_indices = @transform_4, window_bounds = array<i64: 16, 128>}]} {
    %c0 = arith.constant 0 : index
    %c0_0 = arith.constant 0 : index
    %0 = vector.load %arg1[%c0, %c0_0] : memref<16x32xbf16, #tpu.memory_space<vmem>>, vector<16x32xbf16>
    %c0_1 = arith.constant 0 : index
    %c0_2 = arith.constant 0 : index
    %1 = vector.load %arg2[%c0_1, %c0_2] : memref<32x32xbf16, #tpu.memory_space<vmem>>, vector<32x32xbf16>
    %cst = arith.constant dense<0.000000e+00> : vector<16x32xf32>
    %2 = tpu.matmul %0, %1, %cst {dimension_numbers = #tpu.dot_dimension_numbers<[1], [1], [0], [0], [0, 0, 1, 0], [], []>} : vector<16x32xbf16>, vector<32x32xbf16>, vector<16x32xf32> -> vector<16x32xf32>
    %3 = arith.truncf %2 : vector<16x32xf32> to vector<16x32xbf16>
    %c0_3 = arith.constant 0 : index
    %c0_4 = arith.constant 0 : index
    %4 = vector.load %arg3[%c0_3, %c0_4] : memref<32x32xbf16, #tpu.memory_space<vmem>>, vector<32x32xbf16>
    %cst_5 = arith.constant dense<0.000000e+00> : vector<16x32xf32>
    %5 = tpu.matmul %3, %4, %cst_5 {dimension_numbers = #tpu.dot_dimension_numbers<[1], [1], [0], [0], [0, 0, 1, 0], [], []>} : vector<16x32xbf16>, vector<32x32xbf16>, vector<16x32xf32> -> vector<16x32xf32>
    %6 = arith.truncf %5 : vector<16x32xf32> to vector<16x32xbf16>
    %c0_6 = arith.constant 0 : index
    %c0_7 = arith.constant 0 : index
    %7 = vector.load %arg4[%c0_6, %c0_7] : memref<128x32xbf16, #tpu.memory_space<vmem>>, vector<128x32xbf16>
    %cst_8 = arith.constant dense<0.000000e+00> : vector<16x128xf32>
    %8 = tpu.matmul %6, %7, %cst_8 {dimension_numbers = #tpu.dot_dimension_numbers<[1], [1], [0], [0], [0, 0, 1, 0], [], []>} : vector<16x32xbf16>, vector<128x32xbf16>, vector<16x128xf32> -> vector<16x128xf32>
    %c0_9 = arith.constant 0 : index
    %c0_10 = arith.constant 0 : index
    %9 = vector.load %arg5[%c0_9, %c0_10] : memref<16x128xf32, #tpu.memory_space<vmem>>, vector<16x128xf32>
    tpu.vector_store %arg5[%c0_9, %c0_10], %8 {strides = array<i32>} : memref<16x128xf32, #tpu.memory_space<vmem>>, vector<16x128xf32>,
    return
  }
  func.func @transform_0(%arg0: i32) -> (i32, i32) {
    %c0_i32 = arith.constant 0 : i32
    %c0_i32_0 = arith.constant 0 : i32
    return %arg0, %c0_i32 : i32, i32
  }
  func.func @transform_1(%arg0: i32) -> (i32, i32) {
    %c0_i32 = arith.constant 0 : i32
    %c0_i32_0 = arith.constant 0 : i32
    %c0_i32_1 = arith.constant 0 : i32
    return %c0_i32, %c0_i32_0 : i32, i32
  }
  func.func @transform_2(%arg0: i32) -> (i32, i32) {
    %c0_i32 = arith.constant 0 : i32
    %c0_i32_0 = arith.constant 0 : i32
    %c0_i32_1 = arith.constant 0 : i32
    return %c0_i32, %c0_i32_0 : i32, i32
  }
  func.func @transform_3(%arg0: i32) -> (i32, i32) {
    %c0_i32 = arith.constant 0 : i32
    %c0_i32_0 = arith.constant 0 : i32
    %c0_i32_1 = arith.constant 0 : i32
    return %c0_i32, %c0_i32_0 : i32, i32
  }
  func.func @transform_4(%arg0: i32) -> (i32, i32) {
    %c0_i32 = arith.constant 0 : i32
    %c0_i32_0 = arith.constant 0 : i32
    return %arg0, %c0_i32 : i32, i32
  }
}

</mosaic_0001>

<bundles_post_ra>
// kernel: classification_head.1
= control target key start
LH: loop header
LB: loop body
LE: loop exit
PB: predicated region body
PF: predicated region fallthrough
CT: control target
= control target key end

     0   :  { %vm39_vm0 = vcmask 261120   ;;  %v368_v0 = vmov 0.0   ;;  %vm369_vm1 = vmmov 0   ;;  %s458_s1 = inlined_call_operand.vmem [shape: bf16[32,32], index: 1, kind: input, shape index: {}]   ;;  %s459_s0 = inlined_call_operand.vmem [shape: bf16[16,32], index: 0, kind: input, shape index: {}]   ;;  %s460_s2 = inlined_call_operand.vmem [shape: bf16[32,32], index: 2, kind: input, shape index: {}]   ;;  %s461_s3 = inlined_call_operand.vmem [shape: bf16[128,32], index: 3, kind: input, shape index: {}]   ;;  %s462_s4 = inlined_call_operand.vmem [shape: f32[16,128], index: 4, kind: output, shape index: {}]  }
   0x1   :  { %317 = vmatprep.subr.bf16.mxu1 %v368_v0  ;;  %v355_v1 = vld [vmem:[%s458_s1] sm:$0xff]   ;;  %321 = vmatprep.mubr.msk.bf16.mxu1 %vm369_vm1, %v368_v0  ;;  %v356_v3 = vld [vmem:[%s458_s1 + $0x8] sm:$0xff]   ;;  %v362_v14 = vld [vmem:[%s461_s3 + $0x10] sm:$0xff]  }
   0x2   :  { %333 = vmatprep.subr.bf16.mxu0 %v368_v0  ;;  %349 = vmatprep.mubr.msk.bf16.mxu0 %vm369_vm1, %v368_v0  ;;  %v44_v2 = vsel %vm39_vm0, %v355_v1, 0  ;;  %v47_v4 = vsel %vm39_vm0, %v356_v3, 0  ;;  %v358_v5 = vld [vmem:[%s460_s2] sm:$0xff]   ;;  %v359_v8 = vld [vmem:[%s460_s2 + $0x8] sm:$0xff]   ;;  %v222_v15 = vsel %vm39_vm0, %v362_v14, 0  ;;  %v363_v16 = vld [vmem:[%s461_s3 + $0x18] sm:$0xff]  }
   0x3   :  { %318 = vmatpush3.bf16.xpose.msra.mxu1 %v44_v2  ;;  %v357_v6 = vld [vmem:[%s459_s0] sm:$0xff]   ;;  %v109_v7 = vsel %vm39_vm0, %v358_v5, 0  ;;  %v112_v9 = vsel %vm39_vm0, %v359_v8, 0  ;;  %v361_v12 = vld [vmem:[%s461_s3 + $0x8] sm:$0xff]   ;;  %v225_v17 = vsel %vm39_vm0, %v363_v16, 0  ;;  %v366_v22 = vld [vmem:[%s461_s3 + $0x30] sm:$0xff]  }
   0x4   :  { %319 = vmatprep.subr.bf16.mxu1 %v368_v0  ;;  %v360_v10 = vld [vmem:[%s461_s3] sm:$0xff]   ;;  %v219_v13 = vsel %vm39_vm0, %v361_v12, 0  ;;  %v365_v20 = vld [vmem:[%s461_s3 + $0x28] sm:$0xff]   ;;  %v234_v23 = vsel %vm39_vm0, %v366_v22, 0  ;;  %v367_v24 = vld [vmem:[%s461_s3 + $0x38] sm:$0xff]  }
   0x5   :  { %v216_v11 = vsel %vm39_vm0, %v360_v10, 0  ;;  %v364_v18 = vld [vmem:[%s461_s3 + $0x20] sm:$0xff]   ;;  %v231_v21 = vsel %vm39_vm0, %v365_v20, 0  ;;  %v237_v25 = vsel %vm39_vm0, %v367_v24, 0 }
   0x6   :  { %334 = vmatpush3.bf16.xpose.msra.mxu0 %v216_v11  ;;  %v228_v19 = vsel %vm39_vm0, %v364_v18, 0 }
   0x7   :  { %335 = vmatprep.subr.bf16.mxu0 %v368_v0 }
   0xb   :  { %320 = vmatpush3.bf16.xpose.msra.mxu1 %v47_v4 }
   0xc   :  { %325 = vmatprep.subr.bf16.mxu1 %v368_v0 }
   0xe   :  { %336 = vmatpush3.bf16.xpose.msra.mxu0 %v219_v13 }
   0xf   :  { %337 = vmatprep.subr.bf16.mxu0 %v368_v0 }
  0x12   :  { %322 = vmatmul.mubr.msk.bf16.vlgmr.msra.gmra.mrb[0].mxu1 %vm39_vm0, %v357_v6 }
  0x13   :  { %326 = vmatpush3.bf16.xpose.msra.mxu1 %v109_v7  ;;  %329 = vmatprep.mubr.msk.bf16.mxu1 %vm369_vm1, %v368_v0 }
  0x14   :  { %327 = vmatprep.subr.bf16.mxu1 %v368_v0 }
  0x16   :  { %338 = vmatpush3.bf16.xpose.msra.mxu0 %v222_v15 }
  0x17   :  { %339 = vmatprep.subr.bf16.mxu0 %v368_v0 }
  0x1b   :  { %328 = vmatpush3.bf16.xpose.msra.mxu1 %v112_v9 }
  0x1e   :  { %340 = vmatpush3.bf16.xpose.msra.mxu0 %v225_v17 }
  0x1f   :  { %341 = vmatprep.subr.bf16.mxu0 %v368_v0 }
  0x26   :  { %342 = vmatpush3.bf16.xpose.msra.mxu0 %v228_v19 }
  0x27   :  { %343 = vmatprep.subr.bf16.mxu0 %v368_v0 }
  0x2e   :  { %344 = vmatpush3.bf16.xpose.msra.mxu0 %v231_v21 }
  0x2f   :  { %345 = vmatprep.subr.bf16.mxu0 %v368_v0 }
  0x36   :  { %346 = vmatpush3.bf16.xpose.msra.mxu0 %v234_v23 }
  0x37   :  { %347 = vmatprep.subr.bf16.mxu0 %v368_v0 }
  0x3e   :  { %348 = vmatpush3.bf16.xpose.msra.mxu0 %v237_v25 }
  0xe5   :  { %v83_v26 = vpop.f32.mrb[0].mxu1 }
  0xe6   :  { %v323_v27 = vpop.f32.mrb[1].mxu1 }
  0xe7   :  { %v86_v28 = vpop.f32.mrb[2].mxu1 }
  0xe8   :  { %v90_v29 = vpack.c.bf16 %v86_v28, %v83_v26  ;;  %v324_v30 = vpop.f32.mrb[3].mxu1 }
  0xea   :  { %330 = vmatmul.mubr.msk.bf16.vlgmr.msra.gmra.mrb[4].mxu1 %vm39_vm0, %v90_v29 }
 0x1bd   :  { %v148_v31 = vpop.f32.mrb[4].mxu1 }
 0x1be   :  { %v331_v32 = vpop.f32.mrb[5].mxu1 }
 0x1bf   :  { %v151_v33 = vpop.f32.mrb[6].mxu1 }
 0x1c0   :  { %v155_v34 = vpack.c.bf16 %v151_v33, %v148_v31  ;;  %v332_v35 = vpop.f32.mrb[7].mxu1 }
 0x1c2   :  { %350 = vmatmul.mubr.msk.bf16.vlgmr.msra.gmra.mrb[0].mxu0 %vm39_vm0, %v155_v34 }
 0x295   :  { %v273_v36 = vpop.f32.mrb[0].mxu0 }
 0x296   :  { %280 = vst [vmem:[%s462_s4] sm:$0xff] %v273_v36  ;;  %v351_v37 = vpop.f32.mrb[1].mxu0 }
 0x297   :  { %v276_v38 = vpop.f32.mrb[2].mxu0 }
 0x298   :  { %281 = vst [vmem:[%s462_s4 + $0x8] sm:$0xff] %v276_v38  ;;  %v352_v39 = vpop.f32.mrb[3].mxu0 }

</bundles_post_ra>
